<compile_context>
chip_gen: v5e
topology: v5e:2x2
jax: 0.10.0
libtpu: 0.0.40
codegen_flags: <defaults>
</compile_context>

<pallas_src>
import functools

import jax
import jax.numpy as jnp
from jax.experimental import pallas as pl
from jax.experimental.pallas import tpu as pltpu


INPUT_DIM = 28 * 28   # 784
CONTEXT_DIM = 10
H1X = 240
H1C = 50
H2 = 240
OUT = 1
NEG_SLOPE = 0.01      # torch.nn.LeakyReLU default

DEFAULT_TILE_B = 1024  # per-step footprint at 1024 is ~10 MiB: lots of headroom


def _leaky_relu(v):
    return jnp.where(v > 0, v, NEG_SLOPE * v)


def _round_up(n, m):
    return ((n + m - 1) // m) * m


def discriminator_kernel(
    x_ref, c_ref,
    w1x_ref, b1x_ref,
    w1c_ref, b1c_ref,
    w2a_ref, w2b_ref, b2_ref,
    w3r_ref, b3_ref,
    out_ref,
):
    # Inputs arrive in their original dtype; cast to bf16 in-kernel so the
    # wrapper never runs a separate HBM cast/pad pass over the dominant x
    # stream (f32 accumulation below via preferred_element_type).
    x = x_ref[...].astype(jnp.bfloat16)          # (TB, 784)
    c = c_ref[...].astype(jnp.bfloat16)          # (TB, 10)

    # hidden1_x : Linear(784, 240) -> Dropout (identity, eval) -> LeakyReLU
    h1x = jnp.dot(x, w1x_ref[...], preferred_element_type=jnp.float32)
    h1x = _leaky_relu(h1x + b1x_ref[...])

    # hidden1_context : Linear(10, 50) -> Dropout -> LeakyReLU
    h1c = jnp.dot(c, w1c_ref[...], preferred_element_type=jnp.float32)
    h1c = _leaky_relu(h1c + b1c_ref[...])

    # hidden2 on cat([h1x, h1c], dim=1) == h1x @ W2a + h1c @ W2b
    h2 = (jnp.dot(h1x.astype(jnp.bfloat16), w2a_ref[...],
                  preferred_element_type=jnp.float32)
          + jnp.dot(h1c.astype(jnp.bfloat16), w2b_ref[...],
                    preferred_element_type=jnp.float32))
    h2 = _leaky_relu(h2 + b2_ref[...])

    # out_layer : Linear(240, 1) -> Sigmoid.
    # N=1 matmul done as VPU multiply + lane reduce (w3 passed as a (1,240)
    # row), keeping the MXU free of a 1-wide drain.  f32 throughout.
    logit = jnp.sum(h2 * w3r_ref[...], axis=-1, keepdims=True) + b3_ref[...]  # (TB,1)

    # Lane-dense output: relayout the (TB,1) column to a (1,TB) row (XLU slot),
    # apply the sigmoid on the packed row, store as one unmasked lane-dense row.
    row = jnp.transpose(logit)                    # (1, TB)
    out_ref[...] = pl.reciprocal(1.0 + jnp.exp(-row), approx=True)


@functools.partial(jax.jit, static_argnames=("tile_b",))
def discriminator_forward(x, context, params, tile_b=DEFAULT_TILE_B):
    """x: (B, 784), context: (B, 10) -> (B, 1) f32."""
    B = x.shape[0]

    # Batch tile: multiple of 8 sublanes; capped at ~B/2 so the "parallel"
    # grid axis has >= 2 tiles for dual-TensorCore sharding on v7x.
    tb = min(int(tile_b), _round_up(B, 8))
    tb = max(8, _round_up(tb, 8))
    half = max(8, _round_up((B + 1) // 2, 8))
    tb = min(tb, half)

    # Only pad when B is not a multiple of 8.  A non-dividing tail tile is
    # handled by Pallas partial blocks, so no second full copy of x is made.
    Bp = _round_up(B, 8)
    x_in, c_in = x, context
    if Bp != B:
        x_in = jnp.pad(x_in, ((0, Bp - B), (0, 0)))
        c_in = jnp.pad(c_in, ((0, Bp - B), (0, 0)))

    num_tiles = pl.cdiv(Bp, tb)

    # Weights in bf16 (f32 accumulation in-kernel); biases / w3 row stay f32.
    w1x = params["w1x"].astype(jnp.bfloat16)
    w1c = params["w1c"].astype(jnp.bfloat16)
    w2a = params["w2a"].astype(jnp.bfloat16)
    w2b = params["w2b"].astype(jnp.bfloat16)
    b1x = params["b1x"]
    b1c = params["b1c"]
    b2 = params["b2"]
    w3_row = params["w3"].T            # (1, 240) f32, used on the VPU
    b3 = params["b3"]                  # (1, 1)   f32

    def resident(arr):
        nd = arr.ndim
        return pl.BlockSpec(arr.shape, lambda i, _nd=nd: (0,) * _nd)

    in_specs = [
        pl.BlockSpec((tb, INPUT_DIM), lambda i: (i, 0)),     # x tile (orig dtype)
        pl.BlockSpec((tb, CONTEXT_DIM), lambda i: (i, 0)),   # context tile
        resident(w1x), resident(b1x),
        resident(w1c), resident(b1c),
        resident(w2a), resident(w2b), resident(b2),
        resident(w3_row), resident(b3),
    ]
    # Lane-dense output slab: (num_tiles, 1, tb); each grid step owns one
    # full (1, tb) row -> unmasked lane-dense stores.
    out_spec = pl.BlockSpec((None, 1, tb), lambda i: (i, 0, 0))

    out = pl.pallas_call(
        discriminator_kernel,
        out_shape=jax.ShapeDtypeStruct((num_tiles, 1, tb), jnp.float32),
        grid=(num_tiles,),
        in_specs=in_specs,
        out_specs=out_spec,
        compiler_params=pltpu.CompilerParams(
            dimension_semantics=("parallel",),          # dual-TC on v7x
            vmem_limit_bytes=48 * 1024 * 1024,
        ),
    )(x_in, c_in, w1x, b1x, w1c, b1c, w2a, w2b, b2, w3_row, b3)

    return out.reshape(num_tiles * tb, 1)[:B]


def init_params(key):
    """Deterministic init matching PyTorch nn.Linear shapes.

    PyTorch Linear stores weight as (out, in); we store the transpose
    (in, out) so the kernel computes x @ W + b directly.
    Init: U(-1/sqrt(fan_in), 1/sqrt(fan_in)), same as torch default.
    """
    ks = jax.random.split(key, 8)

    def lin(kw, kb, fan_in, fan_out):
        bound = 1.0 / jnp.sqrt(jnp.float32(fan_in))
        w = jax.random.uniform(kw, (fan_in, fan_out), jnp.float32, -bound, bound)
        b = jax.random.uniform(kb, (1, fan_out), jnp.float32, -bound, bound)
        return w, b

    w1x, b1x = lin(ks[0], ks[1], INPUT_DIM, H1X)
    w1c, b1c = lin(ks[2], ks[3], CONTEXT_DIM, H1C)
    w2, b2 = lin(ks[4], ks[5], H1X + H1C, H2)        # 290 -> 240
    w3, b3 = lin(ks[6], ks[7], H2, OUT)

    return {
        "w1x": w1x, "b1x": b1x,
        "w1c": w1c, "b1c": b1c,
        "w2a": w2[:H1X, :],      # rows acting on h1x  (240, 240)
        "w2b": w2[H1X:, :],      # rows acting on h1c  ( 50, 240)
        "b2": b2,
        "w3": w3, "b3": b3,
    }


def reference_forward(x, context, params):
    h1x = _leaky_relu(x @ params["w1x"] + params["b1x"])
    h1c = _leaky_relu(context @ params["w1c"] + params["b1c"])
    h = jnp.concatenate([h1x, h1c], axis=1)
    w2 = jnp.concatenate([params["w2a"], params["w2b"]], axis=0)
    h2 = _leaky_relu(h @ w2 + params["b2"])
    return jax.nn.sigmoid(h2 @ params["w3"] + params["b3"])


if __name__ == "__main__":
    key = jax.random.PRNGKey(0)
    kp, kx, kc = jax.random.split(key, 3)

    params = init_params(kp)

    # Small test: single tile, batch 4 padded to one 8-row tile.
    B = 4
    x = jax.random.normal(kx, (B, INPUT_DIM), jnp.float32)
    context = jax.random.normal(kc, (B, CONTEXT_DIM), jnp.float32)
    out = jax.block_until_ready(discriminator_forward(x, context, params))
    ref = reference_forward(x, context, params)
    assert out.shape == (B, 1)
    assert jnp.allclose(out, ref, atol=2e-2, rtol=2e-2), float(
        jnp.max(jnp.abs(out - ref)))

    # Multi-tile test with a partial tail tile and resident weights:
    # 200 rows, tile of 64 -> 4 grid steps, last step only 8 valid rows.
    B2 = 200
    x2 = jax.random.normal(jax.random.fold_in(kx, 1), (B2, INPUT_DIM), jnp.float32)
    c2 = jax.random.normal(jax.random.fold_in(kc, 1), (B2, CONTEXT_DIM), jnp.float32)
    out2 = jax.block_until_ready(
        discriminator_forward(x2, c2, params, tile_b=64))
    ref2 = reference_forward(x2, c2, params)
    assert out2.shape == (B2, 1)
    assert jnp.allclose(out2, ref2, atol=2e-2, rtol=2e-2), float(
        jnp.max(jnp.abs(out2 - ref2)))

    # Default-tile path: B=256 -> two 128-row tiles (>=2 tiles for dual-TC),
    # lane-dense 128-wide output rows, no padding, no wrapper cast of x.
    B3 = 256
    x3 = jax.random.normal(jax.random.fold_in(kx, 2), (B3, INPUT_DIM), jnp.float32)
    c3 = jax.random.normal(jax.random.fold_in(kc, 2), (B3, CONTEXT_DIM), jnp.float32)
    out3 = jax.block_until_ready(discriminator_forward(x3, c3, params))
    ref3 = reference_forward(x3, c3, params)
    assert out3.shape == (B3, 1)
    assert jnp.allclose(out3, ref3, atol=2e-2, rtol=2e-2), float(
        jnp.max(jnp.abs(out3 - ref3)))

    # TODO(synk): Dropout(p=0.5) is implemented as identity (eval mode); training-mode
    # stochastic masking would need pltpu.prng_random_bits and a mode flag.
    print("KERNEL_OK")
</pallas_src>

<mosaic_0001>
module attributes {stable_mosaic.version = 11 : i64} {
  func.func @discriminator_kernel(%arg0: i32, %arg1: memref<8x784xf32, #tpu.memory_space<vmem>>, %arg2: memref<8x10xf32, #tpu.memory_space<vmem>>, %arg3: memref<784x240xbf16, #tpu.memory_space<vmem>>, %arg4: memref<1x240xf32, #tpu.memory_space<vmem>>, %arg5: memref<10x50xbf16, #tpu.memory_space<vmem>>, %arg6: memref<1x50xf32, #tpu.memory_space<vmem>>, %arg7: memref<240x240xbf16, #tpu.memory_space<vmem>>, %arg8: memref<50x240xbf16, #tpu.memory_space<vmem>>, %arg9: memref<1x240xf32, #tpu.memory_space<vmem>>, %arg10: memref<1x240xf32, #tpu.memory_space<vmem>>, %arg11: memref<1x1xf32, #tpu.memory_space<vmem>>, %arg12: memref<1x1x8xf32, #tpu.memory_space<vmem>>) attributes {dimension_semantics = [#tpu.dimension_semantics<parallel>], iteration_bounds = array<i64: 1>, scalar_prefetch = 0 : i64, scratch_operands = 0 : i64, tpu.core_type = #tpu.core_type<tc>, window_params = [{transform_indices = @transform_0, window_bounds = array<i64: 8, 784>}, {transform_indices = @transform_1, window_bounds = array<i64: 8, 10>}, {pipeline_mode = #tpu.pipeline_mode<synchronous>, transform_indices = @transform_2, window_bounds = array<i64: 784, 240>}, {pipeline_mode = #tpu.pipeline_mode<synchronous>, transform_indices = @transform_3, window_bounds = array<i64: 1, 240>}, {pipeline_mode = #tpu.pipeline_mode<synchronous>, transform_indices = @transform_4, window_bounds = array<i64: 10, 50>}, {pipeline_mode = #tpu.pipeline_mode<synchronous>, transform_indices = @transform_5, window_bounds = array<i64: 1, 50>}, {pipeline_mode = #tpu.pipeline_mode<synchronous>, transform_indices = @transform_6, window_bounds = array<i64: 240, 240>}, {pipeline_mode = #tpu.pipeline_mode<synchronous>, transform_indices = @transform_7, window_bounds = array<i64: 50, 240>}, {pipeline_mode = #tpu.pipeline_mode<synchronous>, transform_indices = @transform_8, window_bounds = array<i64: 1, 240>}, {pipeline_mode = #tpu.pipeline_mode<synchronous>, transform_indices = @transform_9, window_bounds = array<i64: 1, 240>}, {pipeline_mode = #tpu.pipeline_mode<synchronous>, transform_indices = @transform_10, window_bounds = array<i64: 1, 1>}, {transform_indices = @transform_11, window_bounds = array<i64: 1, 1, 8>}]} {
    %c0 = arith.constant 0 : index
    %c0_0 = arith.constant 0 : index
    %0 = vector.load %arg1[%c0, %c0_0] : memref<8x784xf32, #tpu.memory_space<vmem>>, vector<8x784xf32>
    %1 = arith.truncf %0 : vector<8x784xf32> to vector<8x784xbf16>
    %c0_1 = arith.constant 0 : index
    %c0_2 = arith.constant 0 : index
    %2 = vector.load %arg2[%c0_1, %c0_2] : memref<8x10xf32, #tpu.memory_space<vmem>>, vector<8x10xf32>
    %3 = arith.truncf %2 : vector<8x10xf32> to vector<8x10xbf16>
    %c0_3 = arith.constant 0 : index
    %c0_4 = arith.constant 0 : index
    %4 = vector.load %arg3[%c0_3, %c0_4] : memref<784x240xbf16, #tpu.memory_space<vmem>>, vector<784x240xbf16>
    %cst = arith.constant dense<0.000000e+00> : vector<8x240xf32>
    %5 = tpu.matmul %1, %4, %cst {dimension_numbers = #tpu.dot_dimension_numbers<[1], [0], [0], [1], [0, 0, 1, 1], [], []>} : vector<8x784xbf16>, vector<784x240xbf16>, vector<8x240xf32> -> vector<8x240xf32>
    %c0_5 = arith.constant 0 : index
    %c0_6 = arith.constant 0 : index
    %6 = vector.load %arg4[%c0_5, %c0_6] : memref<1x240xf32, #tpu.memory_space<vmem>>, vector<1x240xf32>
    %7 = vector.broadcast %6 : vector<1x240xf32> to vector<8x240xf32>
    %8 = arith.addf %5, %7 : vector<8x240xf32>
    %cst_7 = arith.constant 0.000000e+00 : f32
    %9 = vector.broadcast %cst_7 : f32 to vector<8x240xf32>
    %10 = arith.cmpf ogt, %8, %9 : vector<8x240xf32>
    %cst_8 = arith.constant 0.00999999977 : f32
    %11 = vector.broadcast %cst_8 : f32 to vector<8x240xf32>
    %12 = arith.mulf %11, %8 : vector<8x240xf32>
    %13 = arith.select %10, %8, %12 : vector<8x240xi1>, vector<8x240xf32>
    %c0_9 = arith.constant 0 : index
    %c0_10 = arith.constant 0 : index
    %14 = vector.load %arg5[%c0_9, %c0_10] : memref<10x50xbf16, #tpu.memory_space<vmem>>, vector<10x50xbf16>
    %cst_11 = arith.constant dense<0.000000e+00> : vector<8x50xf32>
    %15 = tpu.matmul %3, %14, %cst_11 {dimension_numbers = #tpu.dot_dimension_numbers<[1], [0], [0], [1], [0, 0, 1, 1], [], []>} : vector<8x10xbf16>, vector<10x50xbf16>, vector<8x50xf32> -> vector<8x50xf32>
    %c0_12 = arith.constant 0 : index
    %c0_13 = arith.constant 0 : index
    %16 = vector.load %arg6[%c0_12, %c0_13] : memref<1x50xf32, #tpu.memory_space<vmem>>, vector<1x50xf32>
    %17 = vector.broadcast %16 : vector<1x50xf32> to vector<8x50xf32>
    %18 = arith.addf %15, %17 : vector<8x50xf32>
    %cst_14 = arith.constant 0.000000e+00 : f32
    %19 = vector.broadcast %cst_14 : f32 to vector<8x50xf32>
    %20 = arith.cmpf ogt, %18, %19 : vector<8x50xf32>
    %cst_15 = arith.constant 0.00999999977 : f32
    %21 = vector.broadcast %cst_15 : f32 to vector<8x50xf32>
    %22 = arith.mulf %21, %18 : vector<8x50xf32>
    %23 = arith.select %20, %18, %22 : vector<8x50xi1>, vector<8x50xf32>
    %24 = arith.truncf %13 : vector<8x240xf32> to vector<8x240xbf16>
    %c0_16 = arith.constant 0 : index
    %c0_17 = arith.constant 0 : index
    %25 = vector.load %arg7[%c0_16, %c0_17] : memref<240x240xbf16, #tpu.memory_space<vmem>>, vector<240x240xbf16>
    %cst_18 = arith.constant dense<0.000000e+00> : vector<8x240xf32>
    %26 = tpu.matmul %24, %25, %cst_18 {dimension_numbers = #tpu.dot_dimension_numbers<[1], [0], [0], [1], [0, 0, 1, 1], [], []>} : vector<8x240xbf16>, vector<240x240xbf16>, vector<8x240xf32> -> vector<8x240xf32>
    %27 = arith.truncf %23 : vector<8x50xf32> to vector<8x50xbf16>
    %c0_19 = arith.constant 0 : index
    %c0_20 = arith.constant 0 : index
    %28 = vector.load %arg8[%c0_19, %c0_20] : memref<50x240xbf16, #tpu.memory_space<vmem>>, vector<50x240xbf16>
    %cst_21 = arith.constant dense<0.000000e+00> : vector<8x240xf32>
    %29 = tpu.matmul %27, %28, %cst_21 {dimension_numbers = #tpu.dot_dimension_numbers<[1], [0], [0], [1], [0, 0, 1, 1], [], []>} : vector<8x50xbf16>, vector<50x240xbf16>, vector<8x240xf32> -> vector<8x240xf32>
    %30 = arith.addf %26, %29 : vector<8x240xf32>
    %c0_22 = arith.constant 0 : index
    %c0_23 = arith.constant 0 : index
    %31 = vector.load %arg9[%c0_22, %c0_23] : memref<1x240xf32, #tpu.memory_space<vmem>>, vector<1x240xf32>
    %32 = vector.broadcast %31 : vector<1x240xf32> to vector<8x240xf32>
    %33 = arith.addf %30, %32 : vector<8x240xf32>
    %cst_24 = arith.constant 0.000000e+00 : f32
    %34 = vector.broadcast %cst_24 : f32 to vector<8x240xf32>
    %35 = arith.cmpf ogt, %33, %34 : vector<8x240xf32>
    %cst_25 = arith.constant 0.00999999977 : f32
    %36 = vector.broadcast %cst_25 : f32 to vector<8x240xf32>
    %37 = arith.mulf %36, %33 : vector<8x240xf32>
    %38 = arith.select %35, %33, %37 : vector<8x240xi1>, vector<8x240xf32>
    %c0_26 = arith.constant 0 : index
    %c0_27 = arith.constant 0 : index
    %39 = vector.load %arg10[%c0_26, %c0_27] : memref<1x240xf32, #tpu.memory_space<vmem>>, vector<1x240xf32>
    %40 = vector.broadcast %39 : vector<1x240xf32> to vector<8x240xf32>
    %41 = arith.mulf %38, %40 : vector<8x240xf32>
    %cst_28 = arith.constant dense<0.000000e+00> : vector<8xf32>
    %42 = vector.multi_reduction <add>, %41, %cst_28 [1] : vector<8x240xf32> to vector<8xf32>
    %43 = vector.shape_cast %42 : vector<8xf32> to vector<8x1xf32>
    %c0_29 = arith.constant 0 : index
    %c0_30 = arith.constant 0 : index
    %44 = vector.load %arg11[%c0_29, %c0_30] : memref<1x1xf32, #tpu.memory_space<vmem>>, vector<1x1xf32>
    %45 = vector.broadcast %44 : vector<1x1xf32> to vector<8x1xf32>
    %46 = arith.addf %43, %45 : vector<8x1xf32>
    %47 = tpu.transpose %46, [1, 0] : vector<8x1xf32> -> vector<1x8xf32>
    %cst_31 = arith.constant 0.000000e+00 : f32
    %48 = vector.broadcast %cst_31 : f32 to vector<1x8xf32>
    %49 = arith.subf %48, %47 : vector<1x8xf32>
    %50 = math.exp %49 : vector<1x8xf32>
    %cst_32 = arith.constant 1.000000e+00 : f32
    %51 = vector.broadcast %cst_32 : f32 to vector<1x8xf32>
    %52 = arith.addf %51, %50 : vector<1x8xf32>
    %53 = tpu.reciprocal %52 {approx = true} : vector<1x8xf32> -> vector<1x8xf32>
    %c0_33 = arith.constant 0 : index
    %c0_34 = arith.constant 0 : index
    %c0_35 = arith.constant 0 : index
    %54 = vector.load %arg12[%c0_33, %c0_34, %c0_35] : memref<1x1x8xf32, #tpu.memory_space<vmem>>, vector<1x1x8xf32>
    %55 = vector.shape_cast %54 : vector<1x1x8xf32> to vector<1x8xf32>
    %56 = vector.shape_cast %53 : vector<1x8xf32> to vector<1x1x8xf32>
    tpu.vector_store %arg12[%c0_33, %c0_34, %c0_35], %56 {strides = array<i32>} : memref<1x1x8xf32, #tpu.memory_space<vmem>>, vector<1x1x8xf32>,
    return
  }
  func.func @transform_0(%arg0: i32) -> (i32, i32) {
    %c0_i32 = arith.constant 0 : i32
    %c0_i32_0 = arith.constant 0 : i32
    return %arg0, %c0_i32 : i32, i32
  }
  func.func @transform_1(%arg0: i32) -> (i32, i32) {
    %c0_i32 = arith.constant 0 : i32
    %c0_i32_0 = arith.constant 0 : i32
    return %arg0, %c0_i32 : i32, i32
  }
  func.func @transform_2(%arg0: i32) -> (i32, i32) {
    %c0_i32 = arith.constant 0 : i32
    %c0_i32_0 = arith.constant 0 : i32
    %c0_i32_1 = arith.constant 0 : i32
    return %c0_i32, %c0_i32_0 : i32, i32
  }
  func.func @transform_3(%arg0: i32) -> (i32, i32) {
    %c0_i32 = arith.constant 0 : i32
    %c0_i32_0 = arith.constant 0 : i32
    %c0_i32_1 = arith.constant 0 : i32
    return %c0_i32, %c0_i32_0 : i32, i32
  }
  func.func @transform_4(%arg0: i32) -> (i32, i32) {
    %c0_i32 = arith.constant 0 : i32
    %c0_i32_0 = arith.constant 0 : i32
    %c0_i32_1 = arith.constant 0 : i32
    return %c0_i32, %c0_i32_0 : i32, i32
  }
  func.func @transform_5(%arg0: i32) -> (i32, i32) {
    %c0_i32 = arith.constant 0 : i32
    %c0_i32_0 = arith.constant 0 : i32
    %c0_i32_1 = arith.constant 0 : i32
    return %c0_i32, %c0_i32_0 : i32, i32
  }
  func.func @transform_6(%arg0: i32) -> (i32, i32) {
    %c0_i32 = arith.constant 0 : i32
    %c0_i32_0 = arith.constant 0 : i32
    %c0_i32_1 = arith.constant 0 : i32
    return %c0_i32, %c0_i32_0 : i32, i32
  }
  func.func @transform_7(%arg0: i32) -> (i32, i32) {
    %c0_i32 = arith.constant 0 : i32
    %c0_i32_0 = arith.constant 0 : i32
    %c0_i32_1 = arith.constant 0 : i32
    return %c0_i32, %c0_i32_0 : i32, i32
  }
  func.func @transform_8(%arg0: i32) -> (i32, i32) {
    %c0_i32 = arith.constant 0 : i32
    %c0_i32_0 = arith.constant 0 : i32
    %c0_i32_1 = arith.constant 0 : i32
    return %c0_i32, %c0_i32_0 : i32, i32
  }
  func.func @transform_9(%arg0: i32) -> (i32, i32) {
    %c0_i32 = arith.constant 0 : i32
    %c0_i32_0 = arith.constant 0 : i32
    %c0_i32_1 = arith.constant 0 : i32
    return %c0_i32, %c0_i32_0 : i32, i32
  }
  func.func @transform_10(%arg0: i32) -> (i32, i32) {
    %c0_i32 = arith.constant 0 : i32
    %c0_i32_0 = arith.constant 0 : i32
    %c0_i32_1 = arith.constant 0 : i32
    return %c0_i32, %c0_i32_0 : i32, i32
  }
  func.func @transform_11(%arg0: i32) -> (i32, i32, i32) {
    %c0_i32 = arith.constant 0 : i32
    %c0_i32_0 = arith.constant 0 : i32
    %c0_i32_1 = arith.constant 0 : i32
    return %arg0, %c0_i32, %c0_i32_0 : i32, i32, i32
  }
}

</mosaic_0001>

<bundles_post_ra>
// kernel: discriminator_forward.1
= control target key start
LH: loop header
LB: loop body
LE: loop exit
PB: predicated region body
PF: predicated region fallthrough
CT: control target
= control target key end

     0   :  { %vm651_vm0 = vcmask 130048   ;;  %vm858_vm1 = vcmask 1044480   ;;  %vm854_vm2 = vcmask 80896   ;;  %vm957_vm3 = vcmask 1040384   ;;  %s2923_s2 = inlined_call_operand.vmem [shape: bf16[784,240], index: 2, kind: input, shape index: {}]   ;;  %s2924_s0 = inlined_call_operand.vmem [shape: f32[8,784], index: 0, kind: input, shape index: {}]   ;;  %s2925_s4 = inlined_call_operand.vmem [shape: bf16[10,50], index: 4, kind: input, shape index: {}]   ;;  %s2926_s6 = inlined_call_operand.vmem [shape: bf16[240,240], index: 6, kind: input, shape index: {}]   ;;  %s2927_s1 = inlined_call_operand.vmem [shape: f32[8,10], index: 1, kind: input, shape index: {}]   ;;  %s2928_s5 = inlined_call_operand.vmem [shape: f32[1,50], index: 5, kind: input, shape index: {}]   ;;  %s2929_s3 = inlined_call_operand.vmem [shape: f32[1,240], index: 3, kind: input, shape index: {}]   ;;  %s2930_s7 = inlined_call_operand.vmem [shape: bf16[50,240], index: 7, kind: input, shape index: {}]   ;;  %s2931_s10 = inlined_call_operand.<no memory space> [shape: f32[1,1], index: 10, kind: input, shape index: {}]   ;;  %s2932_s8 = inlined_call_operand.vmem [shape: f32[1,240], index: 8, kind: input, shape index: {}]   ;;  %s2933_s9 = inlined_call_operand.vmem [shape: f32[1,240], index: 9, kind: input, shape index: {}]   ;;  %s2934_s11 = inlined_call_operand.vmem [shape: f32[1,1,8], index: 11, kind: output, shape index: {}]  }
   0x1   :  { %v1328_v0 = vld [vmem:[%s2923_s2 + $0x70] sm:$0xf]  ;;  %v1832_v1 = vld [vmem:[%s2923_s2 + $0x74] sm:$0xf0]  ;;  %v1320_v11 = vld [vmem:[%s2923_s2 + $0x60] sm:$0xf] }
   0x2   :  { %v1392_v2 = vld [vmem:[%s2923_s2 + $0xf0] sm:$0xf]  ;;  %v1329_v3 = vor.u32 %v1832_v1, %v1328_v0  ;;  %v1848_v4 = vld [vmem:[%s2923_s2 + $0xf4] sm:$0xf0]  ;;  %v1830_v13 = vld [vmem:[%s2923_s2 + $0x64] sm:$0xf0] }
   0x3   :  { %v1456_v5 = vld [vmem:[%s2923_s2 + $0x170] sm:$0xf]  ;;  %v1864_v6 = vld [vmem:[%s2923_s2 + $0x174] sm:$0xf0]  ;;  %v1393_v7 = vor.u32 %v1848_v4, %v1392_v2  ;;  %v1384_v14 = vld [vmem:[%s2923_s2 + $0xe0] sm:$0xf]  ;;  %v1321_v16 = vor.u32 %v1830_v13, %v1320_v11 }
   0x4   :  { %v1457_v8 = vor.u32 %v1864_v6, %v1456_v5  ;;  %v1520_v9 = vld [vmem:[%s2923_s2 + $0x1f0] sm:$0xf]  ;;  %v1880_v10 = vld [vmem:[%s2923_s2 + $0x1f4] sm:$0xf0]  ;;  %655 = vmatpush.bf16.msra.mxu0 %v1329_v3  ;;  %v1846_v15 = vld [vmem:[%s2923_s2 + $0xe4] sm:$0xf0] }
   0x5   :  { %v1521_v12 = vor.u32 %v1880_v10, %v1520_v9  ;;  %668 = vmatpush.bf16.msra.mxu1 %v1393_v7  ;;  %v1385_v17 = vor.u32 %v1846_v15, %v1384_v14  ;;  %v1448_v18 = vld [vmem:[%s2923_s2 + $0x160] sm:$0xf]  ;;  %v1862_v19 = vld [vmem:[%s2923_s2 + $0x164] sm:$0xf0]  ;;  %v1312_v23 = vld [vmem:[%s2923_s2 + $0x50] sm:$0xf] }
   0x6   :  { %681 = vmatpush.bf16.msra.mxu2 %v1457_v8  ;;  %v1512_v20 = vld [vmem:[%s2923_s2 + $0x1e0] sm:$0xf]  ;;  %v1449_v21 = vor.u32 %v1862_v19, %v1448_v18  ;;  %v1878_v22 = vld [vmem:[%s2923_s2 + $0x1e4] sm:$0xf0]  ;;  %v1828_v24 = vld [vmem:[%s2923_s2 + $0x54] sm:$0xf0] }
   0x7   :  { %694 = vmatpush.bf16.msra.mxu3 %v1521_v12  ;;  %v1513_v25 = vor.u32 %v1878_v22, %v1512_v20  ;;  %v1376_v26 = vld [vmem:[%s2923_s2 + $0xd0] sm:$0xf]  ;;  %v1844_v27 = vld [vmem:[%s2923_s2 + $0xd4] sm:$0xf0]  ;;  %v1313_v29 = vor.u32 %v1828_v24, %v1312_v23  ;;  %v1304_v35 = vld [vmem:[%s2923_s2 + $0x40] sm:$0xf] }
   0x8   :  { %v1440_v28 = vld [vmem:[%s2923_s2 + $0x150] sm:$0xf]  ;;  %656 = vmatpush.bf16.msra.mxu0 %v1321_v16  ;;  %v1860_v30 = vld [vmem:[%s2923_s2 + $0x154] sm:$0xf0]  ;;  %v1377_v33 = vor.u32 %v1844_v27, %v1376_v26  ;;  %v1826_v36 = vld [vmem:[%s2923_s2 + $0x44] sm:$0xf0] }
   0x9   :  { %v1504_v31 = vld [vmem:[%s2923_s2 + $0x1d0] sm:$0xf]  ;;  %v1876_v32 = vld [vmem:[%s2923_s2 + $0x1d4] sm:$0xf0]  ;;  %669 = vmatpush.bf16.msra.mxu1 %v1385_v17  ;;  %v1441_v34 = vor.u32 %v1860_v30, %v1440_v28  ;;  %v1368_v37 = vld [vmem:[%s2923_s2 + $0xc0] sm:$0xf]  ;;  %v1305_v44 = vor.u32 %v1826_v36, %v1304_v35 }
   0xa   :  { %682 = vmatpush.bf16.msra.mxu2 %v1449_v21  ;;  %v1505_v38 = vor.u32 %v1876_v32, %v1504_v31  ;;  %v1842_v39 = vld [vmem:[%s2923_s2 + $0xc4] sm:$0xf0]  ;;  %v1432_v40 = vld [vmem:[%s2923_s2 + $0x140] sm:$0xf]  ;;  %v1296_v47 = vld [vmem:[%s2923_s2 + $0x30] sm:$0xf] }
   0xb   :  { %695 = vmatpush.bf16.msra.mxu3 %v1513_v25  ;;  %v1858_v41 = vld [vmem:[%s2923_s2 + $0x144] sm:$0xf0]  ;;  %v1496_v42 = vld [vmem:[%s2923_s2 + $0x1c0] sm:$0xf]  ;;  %v1369_v45 = vor.u32 %v1842_v39, %v1368_v37  ;;  %v1824_v48 = vld [vmem:[%s2923_s2 + $0x34] sm:$0xf0] }
   0xc   :  { %v1874_v43 = vld [vmem:[%s2923_s2 + $0x1c4] sm:$0xf0]  ;;  %657 = vmatpush.bf16.msra.mxu0 %v1313_v29  ;;  %v1433_v46 = vor.u32 %v1858_v41, %v1432_v40  ;;  %v1360_v49 = vld [vmem:[%s2923_s2 + $0xb0] sm:$0xf]  ;;  %v1840_v51 = vld [vmem:[%s2923_s2 + $0xb4] sm:$0xf0]  ;;  %v1297_v56 = vor.u32 %v1824_v48, %v1296_v47 }
   0xd   :  { %670 = vmatpush.bf16.msra.mxu1 %v1377_v33  ;;  %v1497_v50 = vor.u32 %v1874_v43, %v1496_v42  ;;  %v1424_v52 = vld [vmem:[%s2923_s2 + $0x130] sm:$0xf]  ;;  %v1856_v53 = vld [vmem:[%s2923_s2 + $0x134] sm:$0xf0]  ;;  %v1361_v57 = vor.u32 %v1840_v51, %v1360_v49  ;;  %v1288_v59 = vld [vmem:[%s2923_s2 + $0x20] sm:$0xf] }
   0xe   :  { %683 = vmatpush.bf16.msra.mxu2 %v1441_v34  ;;  %v1488_v54 = vld [vmem:[%s2923_s2 + $0x1b0] sm:$0xf]  ;;  %v1872_v55 = vld [vmem:[%s2923_s2 + $0x1b4] sm:$0xf0]  ;;  %v1425_v58 = vor.u32 %v1856_v53, %v1424_v52  ;;  %v1822_v60 = vld [vmem:[%s2923_s2 + $0x24] sm:$0xf0] }
   0xf   :  { %696 = vmatpush.bf16.msra.mxu3 %v1505_v38  ;;  %v1352_v61 = vld [vmem:[%s2923_s2 + $0xa0] sm:$0xf]  ;;  %v1489_v62 = vor.u32 %v1872_v55, %v1488_v54  ;;  %v1838_v63 = vld [vmem:[%s2923_s2 + $0xa4] sm:$0xf0]  ;;  %v1289_v4 = vor.u32 %v1822_v60, %v1288_v59  ;;  %v1280_v7 = vld [vmem:[%s2923_s2 + $0x10] sm:$0xf] }
  0x10   :  { %658 = vmatpush.bf16.msra.mxu0 %v1305_v44  ;;  %v1416_v0 = vld [vmem:[%s2923_s2 + $0x120] sm:$0xf]  ;;  %v1854_v1 = vld [vmem:[%s2923_s2 + $0x124] sm:$0xf0]  ;;  %v1353_v5 = vor.u32 %v1838_v63, %v1352_v61  ;;  %v1820_v8 = vld [vmem:[%s2923_s2 + $0x14] sm:$0xf0] }
  0x11   :  { %671 = vmatpush.bf16.msra.mxu1 %v1369_v45  ;;  %v1480_v2 = vld [vmem:[%s2923_s2 + $0x1a0] sm:$0xf]  ;;  %v1870_v3 = vld [vmem:[%s2923_s2 + $0x1a4] sm:$0xf0]  ;;  %v1417_v6 = vor.u32 %v1854_v1, %v1416_v0  ;;  %v1344_v9 = vld [vmem:[%s2923_s2 + $0x90] sm:$0xf]  ;;  %v1281_v16 = vor.u32 %v1820_v8, %v1280_v7 }
  0x12   :  { %684 = vmatpush.bf16.msra.mxu2 %v1433_v46  ;;  %v1481_v10 = vor.u32 %v1870_v3, %v1480_v2  ;;  %v1836_v11 = vld [vmem:[%s2923_s2 + $0x94] sm:$0xf0]  ;;  %v1408_v12 = vld [vmem:[%s2923_s2 + $0x110] sm:$0xf]  ;;  %v1272_v17 = vld [vmem:[%s2923_s2] sm:$0xf] }
  0x13   :  { %697 = vmatpush.bf16.msra.mxu3 %v1497_v50  ;;  %v1852_v13 = vld [vmem:[%s2923_s2 + $0x114] sm:$0xf0]  ;;  %v1472_v14 = vld [vmem:[%s2923_s2 + $0x190] sm:$0xf]  ;;  %v1818_v18 = vld [vmem:[%s2923_s2 + $0x4] sm:$0xf0]  ;;  %v1345_v19 = vor.u32 %v1836_v11, %v1344_v9 }
  0x14   :  { %659 = vmatpush.bf16.msra.mxu0 %v1297_v56  ;;  %v1868_v15 = vld [vmem:[%s2923_s2 + $0x194] sm:$0xf0]  ;;  %v1409_v20 = vor.u32 %v1852_v13, %v1408_v12  ;;  %v1336_v21 = vld [vmem:[%s2923_s2 + $0x80] sm:$0xf]  ;;  %v1834_v22 = vld [vmem:[%s2923_s2 + $0x84] sm:$0xf0]  ;;  %v1273_v31 = vor.u32 %v1818_v18, %v1272_v17 }
  0x15   :  { %672 = vmatpush.bf16.msra.mxu1 %v1361_v57  ;;  %v1400_v23 = vld [vmem:[%s2923_s2 + $0x100] sm:$0xf]  ;;  %v1473_v24 = vor.u32 %v1868_v15, %v1472_v14  ;;  %v1850_v25 = vld [vmem:[%s2923_s2 + $0x104] sm:$0xf0]  ;;  %v1584_v28 = vld [vmem:[%s2923_s2 + $0x270] sm:$0xf]  ;;  %v1337_v35 = vor.u32 %v1834_v22, %v1336_v21 }
  0x16   :  { %685 = vmatpush.bf16.msra.mxu2 %v1425_v58  ;;  %v1464_v26 = vld [vmem:[%s2923_s2 + $0x180] sm:$0xf]  ;;  %v1866_v27 = vld [vmem:[%s2923_s2 + $0x184] sm:$0xf0]  ;;  %v1896_v29 = vld [vmem:[%s2923_s2 + $0x274] sm:$0xf0]  ;;  %v1401_v36 = vor.u32 %v1850_v25, %v1400_v23 }
  0x17   :  { %698 = vmatpush.bf16.msra.mxu3 %v1489_v62  ;;  %v1648_v30 = vld [vmem:[%s2923_s2 + $0x2f0] sm:$0xf]  ;;  %v1912_v32 = vld [vmem:[%s2923_s2 + $0x2f4] sm:$0xf0]  ;;  %v1831_v33 = vld [vmem:[%s2923_s2 + $0x74] sm:$0xf]  ;;  %v1465_v39 = vor.u32 %v1866_v27, %v1464_v26  ;;  %v1585_v40 = vor.u32 %v1896_v29, %v1584_v28 }
  0x18   :  { %660 = vmatpush.bf16.msra.mxu0 %v1289_v4  ;;  %v1330_v34 = vld [vmem:[%s2923_s2 + $0x78] sm:$0xf0]  ;;  %v1656_v37 = vld [vmem:[%s2923_s2 + $0x300] sm:$0xf]  ;;  %v1914_v38 = vld [vmem:[%s2923_s2 + $0x304] sm:$0xf0]  ;;  %v1649_v44 = vor.u32 %v1912_v32, %v1648_v30 }
  0x19   :  { %673 = vmatpush.bf16.msra.mxu1 %v1353_v5  ;;  %v43_v41 = vld [vmem:[%s2924_s0 + $0x10] sm:$0xff]  ;;  %v1394_v43 = vld [vmem:[%s2923_s2 + $0xf8] sm:$0xf0]  ;;  %v1333_v45 = vor.u32 %v1831_v33, %v1330_v34  ;;  %v1576_v46 = vld [vmem:[%s2923_s2 + $0x260] sm:$0xf]  ;;  %v1657_v49 = vor.u32 %v1914_v38, %v1656_v37  ;;  %vm953_vm7 = vcmask 408576  }
  0x1a   :  { %686 = vmatpush.bf16.msra.mxu2 %v1417_v6  ;;  %v1847_v42 = vld [vmem:[%s2923_s2 + $0xf4] sm:$0xf]  ;;  %v1894_v47 = vld [vmem:[%s2923_s2 + $0x264] sm:$0xf0]  ;;  %v1640_v48 = vld [vmem:[%s2923_s2 + $0x2e0] sm:$0xf]  ;;  %v2262_v53 = vpack.c.bf16 %v43_v41, %v43_v41 }
  0x1b   :  { %699 = vmatpush.bf16.msra.mxu3 %v1481_v10  ;;  %v1910_v50 = vld [vmem:[%s2923_s2 + $0x2e4] sm:$0xf0]  ;;  %v1829_v51 = vld [vmem:[%s2923_s2 + $0x64] sm:$0xf]  ;;  %v1322_v52 = vld [vmem:[%s2923_s2 + $0x68] sm:$0xf0]  ;;  %v1397_v55 = vor.u32 %v1847_v42, %v1394_v43  ;;  %v1577_v56 = vor.u32 %v1894_v47, %v1576_v46 }
  0x1c   :  { %661 = vmatpush.bf16.msra.mxu0 %v1281_v16  ;;  %v41_v54 = vld [vmem:[%s2924_s0] sm:$0xff]  ;;  %v1386_v58 = vld [vmem:[%s2923_s2 + $0xe8] sm:$0xf0]  ;;  %v1568_v59 = vld [vmem:[%s2923_s2 + $0x250] sm:$0xf]  ;;  %v1641_v61 = vor.u32 %v1910_v50, %v1640_v48  ;;  %v1325_v62 = vor.u32 %v1829_v51, %v1322_v52  ;;  %vm1140_vm8 = vcmask 916480  }
  0x1d   :  { %674 = vmatpush.bf16.msra.mxu1 %v1345_v19  ;;  %v1845_v57 = vld [vmem:[%s2923_s2 + $0xe4] sm:$0xf]  ;;  %v2276_v60 = vpack.c.bf16 %v41_v54, %v41_v54  ;;  %v1892_v63 = vld [vmem:[%s2923_s2 + $0x254] sm:$0xf0]  ;;  %v1632_v0 = vld [vmem:[%s2923_s2 + $0x2d0] sm:$0xf] }
  0x1e   :  { %687 = vmatpush.bf16.msra.mxu2 %v1409_v20  ;;  %v1908_v1 = vld [vmem:[%s2923_s2 + $0x2d4] sm:$0xf0]  ;;  %v1827_v2 = vld [vmem:[%s2923_s2 + $0x54] sm:$0xf]  ;;  %v1314_v3 = vld [vmem:[%s2923_s2 + $0x58] sm:$0xf0]  ;;  %v1389_v6 = vor.u32 %v1845_v57, %v1386_v58  ;;  %v1569_v7 = vor.u32 %v1892_v63, %v1568_v59 }
  0x1f   :  { %700 = vmatpush.bf16.msra.mxu3 %v1473_v24  ;;  %v42_v4 = vld [vmem:[%s2924_s0 + $0x8] sm:$0xff]  ;;  %v1843_v8 = vld [vmem:[%s2923_s2 + $0xd4] sm:$0xf]  ;;  %v1378_v9 = vld [vmem:[%s2923_s2 + $0xd8] sm:$0xf0]  ;;  %v1633_v11 = vor.u32 %v1908_v1, %v1632_v0  ;;  %v1317_v12 = vor.u32 %v1827_v2, %v1314_v3  ;;  %vm1264_vm11 = vcmask 57344  }
  0x20   :  { %662 = vmatpush.bf16.msra.mxu0 %v1273_v31  ;;  %v2298_v5 = vpack.c.bf16 %v42_v4, %v42_v4  ;;  %v1560_v10 = vld [vmem:[%s2923_s2 + $0x240] sm:$0xf]  ;;  %v1890_v13 = vld [vmem:[%s2923_s2 + $0x244] sm:$0xf0]  ;;  %v44_v15 = vld [vmem:[%s2924_s0 + $0x18] sm:$0xff]  ;;  %v1381_v20 = vor.u32 %v1843_v8, %v1378_v9 }
  0x21   :  { %675 = vmatpush.bf16.msra.mxu1 %v1337_v35  ;;  %v1624_v14 = vld [vmem:[%s2923_s2 + $0x2c0] sm:$0xf]  ;;  %v1906_v16 = vld [vmem:[%s2923_s2 + $0x2c4] sm:$0xf0]  ;;  %v1825_v17 = vld [vmem:[%s2923_s2 + $0x44] sm:$0xf]  ;;  %v2328_v19 = vpack.c.bf16 %v44_v15, %v44_v15  ;;  %v1561_v21 = vor.u32 %v1890_v13, %v1560_v10 }
  0x22   :  { %688 = vmatpush.bf16.msra.mxu2 %v1401_v36  ;;  %v1306_v18 = vld [vmem:[%s2923_s2 + $0x48] sm:$0xf0]  ;;  %v1841_v22 = vld [vmem:[%s2923_s2 + $0xc4] sm:$0xf]  ;;  %v1625_v24 = vor.u32 %v1906_v16, %v1624_v14  ;;  %v1552_v26 = vld [vmem:[%s2923_s2 + $0x230] sm:$0xf] }
  0x23   :  { %701 = vmatpush.bf16.msra.mxu3 %v1465_v39  ;;  %663 = vmatmul.bf16.vlgmr.msra.gmra.mxu0 %v2276_v60  ;;  %v1370_v23 = vld [vmem:[%s2923_s2 + $0xc8] sm:$0xf0]  ;;  %v1309_v25 = vor.u32 %v1825_v17, %v1306_v18  ;;  %v1888_v27 = vld [vmem:[%s2923_s2 + $0x234] sm:$0xf0]  ;;  %v1616_v28 = vld [vmem:[%s2923_s2 + $0x2b0] sm:$0xf] }
  0x24   :  { %707 = vmatpush.bf16.msrb.mxu0 %v1585_v40  ;;  %676 = vmatmul.bf16.vlgmr.msra.gmra.mxu1 %v2298_v5  ;;  %v1904_v29 = vld [vmem:[%s2923_s2 + $0x2b4] sm:$0xf0]  ;;  %v1823_v30 = vld [vmem:[%s2923_s2 + $0x34] sm:$0xf]  ;;  %v1298_v31 = vld [vmem:[%s2923_s2 + $0x38] sm:$0xf0]  ;;  %v1373_v32 = vor.u32 %v1841_v22, %v1370_v23  ;;  %v1553_v33 = vor.u32 %v1888_v27, %v1552_v26 }
  0x25   :  { %720 = vmatpush.bf16.msrb.mxu1 %v1649_v44  ;;  %689 = vmatmul.bf16.vlgmr.msra.gmra.mxu2 %v2262_v53  ;;  %v1839_v34 = vld [vmem:[%s2923_s2 + $0xb4] sm:$0xf]  ;;  %v1362_v35 = vld [vmem:[%s2923_s2 + $0xb8] sm:$0xf0]  ;;  %v1617_v37 = vor.u32 %v1904_v29, %v1616_v28  ;;  %v1301_v38 = vor.u32 %v1823_v30, %v1298_v31  ;;  %v1544_v39 = vld [vmem:[%s2923_s2 + $0x220] sm:$0xf] }
  0x26   :  { %740 = vmatpush.bf16.msrb.mxu2 %v1657_v49  ;;  %702 = vmatmul.bf16.vlgmr.msra.gmra.mxu3 %v2328_v19  ;;  %v47_v36 = vld [vmem:[%s2924_s0 + $0x30] sm:$0xff]  ;;  %v1886_v40 = vld [vmem:[%s2923_s2 + $0x224] sm:$0xf0]  ;;  %v1608_v41 = vld [vmem:[%s2923_s2 + $0x2a0] sm:$0xf]  ;;  %v1365_v46 = vor.u32 %v1839_v34, %v1362_v35 }
  0x27   :  { %746 = vmatpush.bf16.msrb.mxu3 %v1333_v45  ;;  %v1902_v42 = vld [vmem:[%s2923_s2 + $0x2a4] sm:$0xf0]  ;;  %v1821_v43 = vld [vmem:[%s2923_s2 + $0x24] sm:$0xf]  ;;  %v1290_v44 = vld [vmem:[%s2923_s2 + $0x28] sm:$0xf0]  ;;  %v2382_v45 = vpack.c.bf16 %v47_v36, %v47_v36  ;;  %v1545_v47 = vor.u32 %v1886_v40, %v1544_v39 }
  0x28   :  { %708 = vmatpush.bf16.msrb.mxu0 %v1577_v56  ;;  %v1837_v48 = vld [vmem:[%s2923_s2 + $0xa4] sm:$0xf]  ;;  %v1354_v49 = vld [vmem:[%s2923_s2 + $0xa8] sm:$0xf0]  ;;  %v1609_v50 = vor.u32 %v1902_v42, %v1608_v41  ;;  %v1293_v51 = vor.u32 %v1821_v43, %v1290_v44  ;;  %v1536_v52 = vld [vmem:[%s2923_s2 + $0x210] sm:$0xf] }
  0x29   :  { %721 = vmatpush.bf16.msrb.mxu1 %v1641_v61  ;;  %v1884_v54 = vld [vmem:[%s2923_s2 + $0x214] sm:$0xf0]  ;;  %v1819_v57 = vld [vmem:[%s2923_s2 + $0x14] sm:$0xf]  ;;  %v1282_v58 = vld [vmem:[%s2923_s2 + $0x18] sm:$0xf0]  ;;  %v1357_v59 = vor.u32 %v1837_v48, %v1354_v49 }
  0x2a   :  { %759 = vmatpush.bf16.msra.mxu2 %v1397_v55  ;;  %v1600_v55 = vld [vmem:[%s2923_s2 + $0x290] sm:$0xf]  ;;  %v1900_v56 = vld [vmem:[%s2923_s2 + $0x294] sm:$0xf0]  ;;  %v1537_v61 = vor.u32 %v1884_v54, %v1536_v52  ;;  %v1346_v63 = vld [vmem:[%s2923_s2 + $0x98] sm:$0xf0]  ;;  %v1285_v2 = vor.u32 %v1819_v57, %v1282_v58 }
  0x2b   :  { %747 = vmatpush.bf16.msrb.mxu3 %v1325_v62  ;;  %v1835_v62 = vld [vmem:[%s2923_s2 + $0x94] sm:$0xf]  ;;  %v1528_v0 = vld [vmem:[%s2923_s2 + $0x200] sm:$0xf]  ;;  %v1601_v1 = vor.u32 %v1900_v56, %v1600_v55  ;;  %v1882_v3 = vld [vmem:[%s2923_s2 + $0x204] sm:$0xf0] }
  0x2c   :  { %709 = vmatpush.bf16.msrb.mxu0 %v1569_v7  ;;  %v1592_v4 = vld [vmem:[%s2923_s2 + $0x280] sm:$0xf]  ;;  %v1817_v7 = vld [vmem:[%s2923_s2 + $0x4] sm:$0xf]  ;;  %v1274_v8 = vld [vmem:[%s2923_s2 + $0x8] sm:$0xf0]  ;;  %v1349_v13 = vor.u32 %v1835_v62, %v1346_v63  ;;  %v1529_v14 = vor.u32 %v1882_v3, %v1528_v0 }
  0x2d   :  { %722 = vmatpush.bf16.msrb.mxu1 %v1633_v11  ;;  %v1863_v9 = vld [vmem:[%s2923_s2 + $0x174] sm:$0xf]  ;;  %v1458_v10 = vld [vmem:[%s2923_s2 + $0x178] sm:$0xf0]  ;;  %v45_v17 = vld [vmem:[%s2924_s0 + $0x20] sm:$0xff] }
  0x2e   :  { %760 = vmatpush.bf16.msra.mxu2 %v1389_v6  ;;  %v1898_v6 = vld [vmem:[%s2923_s2 + $0x284] sm:$0xf0]  ;;  %v1879_v11 = vld [vmem:[%s2923_s2 + $0x1f4] sm:$0xf]  ;;  %v1586_v16 = vld [vmem:[%s2923_s2 + $0x278] sm:$0xf0]  ;;  %v2473_v30 = vpack.c.bf16 %v45_v17, %v45_v17 }
  0x2f   :  { %748 = vmatpush.bf16.msrb.mxu3 %v1317_v12  ;;  %v1522_v12 = vld [vmem:[%s2923_s2 + $0x1f8] sm:$0xf0]  ;;  %v1895_v15 = vld [vmem:[%s2923_s2 + $0x274] sm:$0xf]  ;;  %v1593_v18 = vor.u32 %v1898_v6, %v1592_v4  ;;  %v1338_v22 = vld [vmem:[%s2923_s2 + $0x88] sm:$0xf0] }
  0x30   :  { %710 = vmatpush.bf16.msrb.mxu0 %v1561_v21  ;;  %v1833_v21 = vld [vmem:[%s2923_s2 + $0x84] sm:$0xf]  ;;  %v46_v23 = vld [vmem:[%s2924_s0 + $0x28] sm:$0xff]  ;;  %v1911_v26 = vld [vmem:[%s2923_s2 + $0x2f4] sm:$0xf]  ;;  %v1589_v29 = vor.u32 %v1895_v15, %v1586_v16 }
  0x31   :  { %723 = vmatpush.bf16.msrb.mxu1 %v1625_v24  ;;  %v1461_v24 = vor.u32 %v1863_v9, %v1458_v10  ;;  %v1650_v27 = vld [vmem:[%s2923_s2 + $0x2f8] sm:$0xf0]  ;;  %v1861_v28 = vld [vmem:[%s2923_s2 + $0x164] sm:$0xf]  ;;  %v1450_v31 = vld [vmem:[%s2923_s2 + $0x168] sm:$0xf0]  ;;  %v1341_v34 = vor.u32 %v1833_v21, %v1338_v22  ;;  %v2484_v35 = vpack.c.bf16 %v46_v23, %v46_v23 }
  0x32   :  { %761 = vmatpush.bf16.msra.mxu2 %v1381_v20  ;;  %v1277_v20 = vor.u32 %v1817_v7, %v1274_v8  ;;  %v1893_v36 = vld [vmem:[%s2923_s2 + $0x264] sm:$0xf]  ;;  %v1453_v39 = vor.u32 %v1861_v28, %v1450_v31  ;;  %v1642_v42 = vld [vmem:[%s2923_s2 + $0x2e8] sm:$0xf0]  ;;  %v1859_v43 = vld [vmem:[%s2923_s2 + $0x154] sm:$0xf] }
  0x33   :  { %749 = vmatpush.bf16.msrb.mxu3 %v1309_v25  ;;  %v1525_v25 = vor.u32 %v1879_v11, %v1522_v12  ;;  %v1909_v41 = vld [vmem:[%s2923_s2 + $0x2e4] sm:$0xf]  ;;  %v1506_v48 = vld [vmem:[%s2923_s2 + $0x1d8] sm:$0xf0]  ;;  %v1891_v49 = vld [vmem:[%s2923_s2 + $0x254] sm:$0xf] }
  0x34   :  { %711 = vmatpush.bf16.msrb.mxu0 %v1553_v33  ;;  %v1514_v33 = vld [vmem:[%s2923_s2 + $0x1e8] sm:$0xf0]  ;;  %v1907_v55 = vld [vmem:[%s2923_s2 + $0x2d4] sm:$0xf]  ;;  %v1634_v56 = vld [vmem:[%s2923_s2 + $0x2d8] sm:$0xf0] }
  0x35   :  { %724 = vmatpush.bf16.msrb.mxu1 %v1617_v37  ;;  %1662 = vmatmul.msk.bf16.vlgmr.msrb.gmra.mxu2 %vm651_vm0, %v2382_v45  ;;  %v1578_v37 = vld [vmem:[%s2923_s2 + $0x268] sm:$0xf0]  ;;  %v1857_v57 = vld [vmem:[%s2923_s2 + $0x144] sm:$0xf]  ;;  %v1637_v0 = vor.u32 %v1907_v55, %v1634_v56  ;;  %v1855_v4 = vld [vmem:[%s2923_s2 + $0x134] sm:$0xf] }
  0x36   :  { %762 = vmatpush.bf16.msra.mxu2 %v1373_v32  ;;  %v1877_v32 = vld [vmem:[%s2923_s2 + $0x1e4] sm:$0xf]  ;;  %v1581_v44 = vor.u32 %v1893_v36, %v1578_v37  ;;  %v1562_v63 = vld [vmem:[%s2923_s2 + $0x248] sm:$0xf0]  ;;  %v1426_v7 = vld [vmem:[%s2923_s2 + $0x138] sm:$0xf0] }
  0x37   :  { %750 = vmatpush.bf16.msrb.mxu3 %v1301_v38  ;;  %v1653_v38 = vor.u32 %v1911_v26, %v1650_v27  ;;  %v1517_v40 = vor.u32 %v1877_v32, %v1514_v33  ;;  %v1889_v62 = vld [vmem:[%s2923_s2 + $0x244] sm:$0xf]  ;;  %v1871_v8 = vld [vmem:[%s2923_s2 + $0x1b4] sm:$0xf]  ;;  %v1490_v9 = vld [vmem:[%s2923_s2 + $0x1b8] sm:$0xf0] }
  0x38   :  { %712 = vmatpush.bf16.msrb.mxu0 %v1545_v47  ;;  %v1875_v47 = vld [vmem:[%s2923_s2 + $0x1d4] sm:$0xf]  ;;  %v1905_v3 = vld [vmem:[%s2923_s2 + $0x2c4] sm:$0xf]  ;;  %v1565_v6 = vor.u32 %v1889_v62, %v1562_v63  ;;  %v1554_v11 = vld [vmem:[%s2923_s2 + $0x238] sm:$0xf0] }
  0x39   :  { %725 = vmatpush.bf16.msrb.mxu1 %v1609_v50  ;;  %v1570_v50 = vld [vmem:[%s2923_s2 + $0x258] sm:$0xf0]  ;;  %v1509_v54 = vor.u32 %v1875_v47, %v1506_v48  ;;  %v1887_v10 = vld [vmem:[%s2923_s2 + $0x234] sm:$0xf]  ;;  %v1853_v17 = vld [vmem:[%s2923_s2 + $0x124] sm:$0xf] }
  0x3a   :  { %763 = vmatpush.bf16.msra.mxu2 %v1365_v46  ;;  %v1442_v46 = vld [vmem:[%s2923_s2 + $0x158] sm:$0xf0]  ;;  %v1573_v58 = vor.u32 %v1891_v49, %v1570_v50  ;;  %v1903_v15 = vld [vmem:[%s2923_s2 + $0x2b4] sm:$0xf]  ;;  %v1869_v21 = vld [vmem:[%s2923_s2 + $0x1a4] sm:$0xf] }
  0x3b   :  { %751 = vmatpush.bf16.msrb.mxu3 %v1293_v51  ;;  %v1645_v51 = vor.u32 %v1909_v41, %v1642_v42  ;;  %v1445_v52 = vor.u32 %v1859_v43, %v1442_v46  ;;  %v1618_v16 = vld [vmem:[%s2923_s2 + $0x2b8] sm:$0xf0]  ;;  %v1482_v22 = vld [vmem:[%s2923_s2 + $0x1a8] sm:$0xf0]  ;;  %v1885_v23 = vld [vmem:[%s2923_s2 + $0x224] sm:$0xf] }
  0x3c   :  { %713 = vmatpush.bf16.msrb.mxu0 %v1537_v61  ;;  %v1498_v61 = vld [vmem:[%s2923_s2 + $0x1c8] sm:$0xf0]  ;;  %v1485_v27 = vor.u32 %v1869_v21, %v1482_v22  ;;  %v1901_v28 = vld [vmem:[%s2923_s2 + $0x2a4] sm:$0xf]  ;;  %v1851_v31 = vld [vmem:[%s2923_s2 + $0x114] sm:$0xf] }
  0x3d   :  { %726 = vmatpush.bf16.msrb.mxu1 %v1601_v1  ;;  %v1410_v33 = vld [vmem:[%s2923_s2 + $0x118] sm:$0xf0]  ;;  %v1883_v37 = vld [vmem:[%s2923_s2 + $0x214] sm:$0xf]  ;;  %v1915_v41 = vld [vmem:[%s2925_s4] sm:$0x10] }
  0x3e   :  { %764 = vmatpush.bf16.msra.mxu2 %v1357_v59  ;;  %v1873_v59 = vld [vmem:[%s2923_s2 + $0x1c4] sm:$0xf]  ;;  %v1474_v36 = vld [vmem:[%s2923_s2 + $0x198] sm:$0xf0]  ;;  %v1413_v42 = vor.u32 %v1851_v31, %v1410_v33  ;;  %v1402_v49 = vld [vmem:[%s2923_s2 + $0x108] sm:$0xf0] }
  0x3f   :  { %752 = vmatpush.bf16.msrb.mxu3 %v1285_v2  ;;  %v1501_v2 = vor.u32 %v1873_v59, %v1498_v61  ;;  %v1602_v46 = vld [vmem:[%s2923_s2 + $0x298] sm:$0xf0]  ;;  %v1849_v47 = vld [vmem:[%s2923_s2 + $0x104] sm:$0xf]  ;;  %v1594_v63 = vld [vmem:[%s2923_s2 + $0x288] sm:$0xf0] }
  0x40   :  { %714 = vmatpush.bf16.msrb.mxu0 %v1529_v14  ;;  %v1493_v14 = vor.u32 %v1871_v8, %v1490_v9  ;;  %v1865_v50 = vld [vmem:[%s2923_s2 + $0x184] sm:$0xf]  ;;  %v1927_v8 = vld [vmem:[%s2926_s6 + $0x54] sm:$0xf0]  ;;  %v917_v31 = vld [vmem:[%s2930_s7 + $0x30] sm:$0x11] }
  0x41   :  { %727 = vmatpush.bf16.msrb.mxu1 %v1593_v18  ;;  %v1557_v18 = vor.u32 %v1887_v10, %v1554_v11  ;;  %v1897_v62 = vld [vmem:[%s2923_s2 + $0x284] sm:$0xf]  ;;  %v1925_v10 = vld [vmem:[%s2926_s6 + $0x44] sm:$0xf0]  ;;  %v1919_v21 = vld [vmem:[%s2926_s6 + $0x14] sm:$0xf0] }
  0x42   :  { %765 = vmatpush.bf16.msra.mxu2 %v1349_v13  ;;  %v1429_v13 = vor.u32 %v1855_v4, %v1426_v7 }
  0x43   :  { %753 = vmatpush.bf16.msrb.mxu3 %v1277_v20  ;;  %715 = vmatmul.bf16.vlgmr.msrb.gmra.mxu0 %v2473_v30  ;;  %v1418_v20 = vld [vmem:[%s2923_s2 + $0x128] sm:$0xf0] }
  0x44   :  { %772 = vmatpush.bf16.msra.mxu0 %v1461_v24  ;;  %728 = vmatmul.bf16.vlgmr.msrb.gmra.mxu1 %v2484_v35  ;;  %v1546_v24 = vld [vmem:[%s2923_s2 + $0x228] sm:$0xf0]  ;;  %v1421_v26 = vor.u32 %v1853_v17, %v1418_v20  ;;  %v1705_v20 = vld [vmem:[%s2926_s6 + $0x10] sm:$0xf] }
  0x45   :  { %785 = vmatpush.bf16.msra.mxu1 %v1525_v25  ;;  %v1621_v25 = vor.u32 %v1903_v15, %v1618_v16  ;;  %v1549_v32 = vor.u32 %v1885_v23, %v1546_v24  ;;  %v1713_v15 = vld [vmem:[%s2926_s6 + $0x20] sm:$0xf]  ;;  %v1921_v16 = vld [vmem:[%s2926_s6 + $0x24] sm:$0xf0]  ;;  %v1706_v22 = vor.u32 %v1919_v21, %v1705_v20 }
  0x46   :  { %766 = vmatpush.bf16.msra.mxu2 %v1341_v34  ;;  %754 = vmatmul.bf16.vlgmr.msrb.gmra.mxu3 %v2276_v60  ;;  %v1434_v60 = vld [vmem:[%s2923_s2 + $0x148] sm:$0xf0]  ;;  %v1867_v34 = vld [vmem:[%s2923_s2 + $0x194] sm:$0xf]  ;;  %v1714_v17 = vor.u32 %v1921_v16, %v1713_v15  ;;  %v1697_v24 = vld [vmem:[%s2926_s6] sm:$0xf] }
  0x47   :  { %798 = vmatpush.bf16.msra.mxu3 %v1589_v29  ;;  %v1437_v1 = vor.u32 %v1857_v57, %v1434_v60  ;;  %v1610_v29 = vld [vmem:[%s2923_s2 + $0x2a8] sm:$0xf0]  ;;  %v1477_v43 = vor.u32 %v1867_v34, %v1474_v36  ;;  %v1913_v57 = vld [vmem:[%s2923_s2 + $0x304] sm:$0xf]  ;;  %v1405_v60 = vor.u32 %v1849_v47, %v1402_v49  ;;  %v937_v34 = vunpack.c.l.b16 %v917_v31  ;;  %v1945_v36 = vld [vmem:[%s2926_s6 + $0xe4] sm:$0xf0] }
  0x48   :  { %773 = vmatpush.bf16.msra.mxu0 %v1453_v39  ;;  %v1613_v39 = vor.u32 %v1901_v28, %v1610_v29  ;;  %v938_v49 = vunpack.c.h.b16 %v917_v31  ;;  %v1930_v15 = vld [vmem:[%s2926_s6 + $0x74] sm:$0xf]  ;;  %v1755_v16 = vld [vmem:[%s2926_s6 + $0x78] sm:$0xf0]  ;;  %v1928_v31 = vld [vmem:[%s2926_s6 + $0x64] sm:$0xf] }
  0x49   :  { %786 = vmatpush.bf16.msra.mxu1 %v1517_v40  ;;  %767 = vmatmul.bf16.vlgmr.msra.gmra.mxu2 %v2298_v5  ;;  %v1626_v5 = vld [vmem:[%s2923_s2 + $0x2c8] sm:$0xf0]  ;;  %v1666_v40 = vld [vmem:[%s2925_s4] sm:$0xf] }
  0x4a   :  { %811 = vmatpush.bf16.msrb.mxu2 %v1653_v38  ;;  %v1629_v12 = vor.u32 %v1905_v3, %v1626_v5  ;;  %v1538_v38 = vld [vmem:[%s2923_s2 + $0x218] sm:$0xf0]  ;;  %v1667_v55 = vor.u32 %v1915_v41, %v1666_v40  ;;  %v1931_v3 = vld [vmem:[%s2926_s6 + $0x74] sm:$0xf0]  ;;  %v1597_v5 = vor.u32 %v1897_v62, %v1594_v63  ;;  %v1950_v63 = vld [vmem:[%s2930_s7 + $0x24] sm:$0xf] }
  0x4b   :  { %799 = vmatpush.bf16.msra.mxu3 %v1581_v44  ;;  %v1899_v44 = vld [vmem:[%s2923_s2 + $0x294] sm:$0xf]  ;;  %v1541_v48 = vor.u32 %v1883_v37, %v1538_v38  ;;  %v1949_v62 = vld [vmem:[%s2930_s7 + $0x14] sm:$0xf0] }
  0x4c   :  { %774 = vmatpush.bf16.msra.mxu0 %v1445_v52  ;;  %v1881_v52 = vld [vmem:[%s2923_s2 + $0x204] sm:$0xf]  ;;  %v1605_v56 = vor.u32 %v1899_v44, %v1602_v46 }
  0x4d   :  { %787 = vmatpush.bf16.msra.mxu1 %v1509_v54  ;;  %v1530_v54 = vld [vmem:[%s2923_s2 + $0x208] sm:$0xf0] }
  0x4e   :  { %812 = vmatpush.bf16.msrb.mxu2 %v1645_v51  ;;  %v1466_v51 = vld [vmem:[%s2923_s2 + $0x188] sm:$0xf0]  ;;  %v1533_v61 = vor.u32 %v1881_v52, %v1530_v54  ;;  %v946_v52 = vpack.c.b16 %v938_v49, %v938_v49  ;;  %v1803_v49 = vld [vmem:[%s2926_s6 + $0xd8] sm:$0xf0] }
  0x4f   :  { %800 = vmatpush.bf16.msra.mxu3 %v1573_v58  ;;  %v1658_v58 = vld [vmem:[%s2923_s2 + $0x308] sm:$0xf0]  ;;  %v1469_v59 = vor.u32 %v1865_v50, %v1466_v51  ;;  %v1687_v50 = vld [vmem:[%s2930_s7 + $0x20] sm:$0xf]  ;;  %v1951_v51 = vld [vmem:[%s2930_s7 + $0x24] sm:$0xf0] }
  0x50   :  { %775 = vmatpush.bf16.msra.mxu0 %v1437_v1  ;;  %v1661_v1 = vor.u32 %v1913_v57, %v1658_v58  ;;  %v1943_v57 = vld [vmem:[%s2926_s6 + $0xd4] sm:$0xf0]  ;;  %v962_v58 = vsel %vm957_vm3, %v946_v52, 0  ;;  %v1761_v52 = vld [vmem:[%s2926_s6 + $0x80] sm:$0xf] }
  0x51   :  { %788 = vmatpush.bf16.msra.mxu1 %v1501_v2  ;;  %v1753_v2 = vld [vmem:[%s2926_s6 + $0x70] sm:$0xf] }
  0x52   :  { %813 = vmatpush.bf16.msrb.mxu2 %v1637_v0  ;;  %v860_v0 = vsel %vm858_vm1, %v1667_v55, 0  ;;  %v1754_v4 = vor.u32 %v1931_v3, %v1753_v2  ;;  %v1688_v55 = vor.u32 %v1951_v51, %v1687_v50  ;;  %v1689_v3 = vld [vmem:[%s2930_s7 + $0x28] sm:$0xf0] }
  0x53   :  { %801 = vmatpush.bf16.msra.mxu3 %v1565_v6  ;;  %v55_v6 = vld [vmem:[%s2927_s1] sm:$0xff] }
  0x54   :  { %776 = vmatpush.bf16.msra.mxu0 %v1429_v13  ;;  %v56_v7 = vpack.c.bf16 %v55_v6, %v55_v6  ;;  %v1923_v13 = vld [vmem:[%s2926_s6 + $0x34] sm:$0xf0] }
  0x55   :  { %789 = vmatpush.bf16.msra.mxu1 %v1493_v14 }
  0x56   :  { %814 = vmatpush.bf16.msrb.mxu2 %v1629_v12  ;;  %v1721_v12 = vld [vmem:[%s2926_s6 + $0x30] sm:$0xf] }
  0x57   :  { %802 = vmatpush.bf16.msra.mxu3 %v1557_v18  ;;  %v1722_v14 = vor.u32 %v1923_v13, %v1721_v12  ;;  %v1939_v12 = vld [vmem:[%s2926_s6 + $0xb4] sm:$0xf0] }
  0x58   :  { %777 = vmatpush.bf16.msra.mxu0 %v1421_v26 }
  0x59   :  { %790 = vmatpush.bf16.msra.mxu1 %v1485_v27  ;;  %v2718_v27 = vld [vmem:[%s2929_s3] sm:$0x3] }
  0x5a   :  { %815 = vmatpush.bf16.msrb.mxu2 %v1621_v25  ;;  %v1917_v25 = vld [vmem:[%s2926_s6 + $0x4] sm:$0xf0]  ;;  %v157_v33 = vperm.slane %v2718_v27, 0 }
  0x5b   :  { %803 = vmatpush.bf16.msra.mxu3 %v1549_v32  ;;  %v1698_v26 = vor.u32 %v1917_v25, %v1697_v24  ;;  %v1809_v32 = vld [vmem:[%s2926_s6 + $0xe0] sm:$0xf] }
  0x5c   :  { %778 = vmatpush.bf16.msra.mxu0 %v1413_v42  ;;  %v1810_v37 = vor.u32 %v1945_v36, %v1809_v32  ;;  %v1747_v36 = vld [vmem:[%s2926_s6 + $0x68] sm:$0xf0] }
  0x5d   :  { %791 = vmatpush.bf16.msra.mxu1 %v1477_v43 }
  0x5e   :  { %816 = vmatpush.bf16.msrb.mxu2 %v1613_v39  ;;  %v945_v39 = vpack.c.b16 %v937_v34, %v937_v34 }
  0x5f   :  { %804 = vmatpush.bf16.msra.mxu3 %v1541_v48 }
  0x60   :  { %779 = vmatpush.bf16.msra.mxu0 %v1405_v60  ;;  %v959_v42 = vsel %vm957_vm3, %v945_v39, 0  ;;  %v1750_v39 = vor.u32 %v1928_v31, %v1747_v36 }
  0x61   :  { %792 = vmatpush.bf16.msra.mxu1 %v1469_v59 }
  0x62   :  { %817 = vmatpush.bf16.msrb.mxu2 %v1605_v56  ;;  %v1801_v56 = vld [vmem:[%s2926_s6 + $0xd0] sm:$0xf] }
  0x63   :  { %805 = vmatpush.bf16.msra.mxu3 %v1533_v61  ;;  %780 = vmatmul.bf16.vlgmr.msra.gmra.mxu0 %v2262_v53  ;;  %v1745_v53 = vld [vmem:[%s2926_s6 + $0x60] sm:$0xf]  ;;  %v1802_v60 = vor.u32 %v1943_v57, %v1801_v56  ;;  %v1679_v61 = vld [vmem:[%s2930_s7 + $0x10] sm:$0xf] }
  0x64   :  { %831 = vmatpush.bf16.msrb.mxu0 %v1661_v1  ;;  %793 = vmatmul.bf16.vlgmr.msra.gmra.mxu1 %v2328_v19  ;;  %v1929_v19 = vld [vmem:[%s2926_s6 + $0x64] sm:$0xf0]  ;;  %v1680_v2 = vor.u32 %v1949_v62, %v1679_v61 }
  0x65   :  { %869 = vmatpush.bf16.msrb.mxu1 %v860_v0 }
  0x66   :  { %806 = vmatmul.bf16.vlgmr.msra.gmra.mxu3 %v2473_v30  ;;  %818 = vmatpush.bf16.msrb.mxu2 %v1597_v5  ;;  %v1746_v30 = vor.u32 %v1929_v19, %v1745_v53  ;;  %v1793_v5 = vld [vmem:[%s2926_s6 + $0xc0] sm:$0xf] }
  0x67   :  { %968 = vmatpush.bf16.msrb.mxu3 %v959_v42  ;;  %v1935_v42 = vld [vmem:[%s2926_s6 + $0x94] sm:$0xf0] }
  0x68   :  { %981 = vmatpush.bf16.msra.mxu0 %v962_v58  ;;  %v1731_v58 = vld [vmem:[%s2926_s6 + $0x48] sm:$0xf0] }
  0x69   :  { %1144 = vmatpush.bf16.msra.mxu1 %v1754_v4  ;;  %819 = vmatmul.bf16.vlgmr.msrb.gmra.mxu2 %v2484_v35  ;;  %v1737_v35 = vld [vmem:[%s2926_s6 + $0x50] sm:$0xf]  ;;  %v1941_v4 = vld [vmem:[%s2926_s6 + $0xc4] sm:$0xf0] }
  0x6a   :  { %v1738_v9 = vor.u32 %v1927_v8, %v1737_v35  ;;  %1158 = vmatpush.bf16.msra.mxu2 %v1810_v37  ;;  %v1794_v53 = vor.u32 %v1941_v4, %v1793_v5  ;;  %v1947_v35 = vld [vmem:[%s2930_s7 + $0x4] sm:$0xf0]  ;;  %v1948_v8 = vld [vmem:[%s2930_s7 + $0x14] sm:$0xf]  ;;  %v1944_v37 = vld [vmem:[%s2926_s6 + $0xe4] sm:$0xf] }
  0x6b   :  { %969 = vmatpush.bf16.msrb.mxu3 %v1688_v55  ;;  %v1924_v55 = vld [vmem:[%s2926_s6 + $0x44] sm:$0xf]  ;;  %v1787_v5 = vld [vmem:[%s2926_s6 + $0xb8] sm:$0xf0] }
  0x6c   :  { %v1734_v61 = vor.u32 %v1924_v55, %v1731_v58  ;;  %v16_v55 = vstv %s2931_s10 }
  0x6d   :  { %1145 = vmatpush.bf16.msra.mxu1 %v1746_v30  ;;  %v1671_v30 = vld [vmem:[%s2930_s7] sm:$0xf]  ;;  %17 = vst [vmem:[#allocation2] sm:$0x1] %v16_v55 }
  0x6e   :  { %1159 = vmatpush.bf16.msra.mxu2 %v1802_v60  ;;  %v1940_v60 = vld [vmem:[%s2926_s6 + $0xc4] sm:$0xf] }
  0x6f   :  { %970 = vmatpush.bf16.msrb.mxu3 %v1680_v2  ;;  %v158_v2 = vperm.slane %v2718_v27, 1  ;;  %v1779_v27 = vld [vmem:[%s2926_s6 + $0xa8] sm:$0xf0] }
  0x71   :  { %1146 = vmatpush.bf16.msra.mxu1 %v1738_v9  ;;  %v1672_v9 = vor.u32 %v1947_v35, %v1671_v30  ;;  %v1918_v35 = vld [vmem:[%s2926_s6 + $0x14] sm:$0xf] }
  0x72   :  { %1160 = vmatpush.bf16.msra.mxu2 %v1794_v53  ;;  %v1936_v53 = vld [vmem:[%s2926_s6 + $0xa4] sm:$0xf] }
  0x73   :  { %1663 = vmatmul.msk.bf16.vlgmr.msrb.gmra.mxu0 %vm651_vm0, %v2382_v45  ;;  %v1729_v45 = vld [vmem:[%s2926_s6 + $0x40] sm:$0xf]  ;;  %971 = vmatpush.bf16.msrb.mxu3 %v1672_v9  ;;  %v1782_v30 = vor.u32 %v1936_v53, %v1779_v27  ;;  %v1934_v9 = vld [vmem:[%s2926_s6 + $0x94] sm:$0xf] }
  0x74   :  { %1668 = vmatmul.msk.bf16.vlgmr.msrb.gmra.mxu1 %vm854_vm2, %v56_v7  ;;  %v1730_v11 = vor.u32 %v1925_v10, %v1729_v45  ;;  %v1692_v7 = vor.u32 %v1950_v63, %v1689_v3  ;;  %v1681_v10 = vld [vmem:[%s2930_s7 + $0x18] sm:$0xf0]  ;;  %v1922_v63 = vld [vmem:[%s2926_s6 + $0x34] sm:$0xf]  ;;  %v1210_v53 = vld [vmem:[%s2933_s9] sm:$0x3] }
  0x75   :  { %v1684_v13 = vor.u32 %v1948_v8, %v1681_v10  ;;  %v1707_v8 = vld [vmem:[%s2926_s6 + $0x18] sm:$0xf0] }
  0x76   :  { %1147 = vmatpush.bf16.msra.mxu1 %v1730_v11  ;;  %982 = vmatpush.bf16.msra.mxu0 %v1692_v7  ;;  %v1785_v11 = vld [vmem:[%s2926_s6 + $0xb0] sm:$0xf]  ;;  %v1715_v7 = vld [vmem:[%s2926_s6 + $0x28] sm:$0xf0]  ;;  %v1771_v10 = vld [vmem:[%s2926_s6 + $0x98] sm:$0xf0] }
  0x7a   :  { %1148 = vmatpush.bf16.msra.mxu1 %v1722_v14  ;;  %v1786_v14 = vor.u32 %v1939_v12, %v1785_v11  ;;  %983 = vmatpush.bf16.msra.mxu0 %v1684_v13  ;;  %v1710_v11 = vor.u32 %v1918_v35, %v1707_v8  ;;  %v1212_v35 = vperm.slane %v1210_v53, 0 }
  0x7c   :  { %1161 = vmatpush.bf16.msra.mxu2 %v1786_v14  ;;  %v1774_v14 = vor.u32 %v1934_v9, %v1771_v10 }
  0x7e   :  { %1149 = vmatpush.bf16.msra.mxu1 %v1714_v17 }
  0x82   :  { %1150 = vmatpush.bf16.msra.mxu1 %v1706_v22  ;;  %v1946_v22 = vld [vmem:[%s2930_s7 + $0x4] sm:$0xf] }
  0x86   :  { %1151 = vmatpush.bf16.msra.mxu1 %v1698_v26 }
  0xa0   :  { %v664_v18 = vpop.f32.mrf.mxu0 }
  0xa1   :  { %v677_v23 = vpop.f32.mrf.mxu1  ;;  %v665_v40 = vadd.f32 %v664_v18, %v157_v33  ;;  %v1758_v18 = vor.u32 %v1930_v15, %v1755_v16  ;;  %v1916_v15 = vld [vmem:[%s2926_s6 + $0x4] sm:$0xf]  ;;  %v1699_v16 = vld [vmem:[%s2926_s6 + $0x8] sm:$0xf0] }
  0xa3   :  { %v678_v44 = vadd.f32 %v677_v23, %v665_v40  ;;  %v1673_v23 = vld [vmem:[%s2930_s7 + $0x8] sm:$0xf0]  ;;  %1170 = vmatpush.bf16.msra.mxu3 %v1758_v18  ;;  %v1932_v18 = vld [vmem:[%s2926_s6 + $0x84] sm:$0xf] }
  0xa4   :  { %v1676_v26 = vor.u32 %v1946_v22, %v1673_v23 }
  0xa6   :  { %984 = vmatpush.bf16.msra.mxu0 %v1676_v26 }
  0xa7   :  { %1171 = vmatpush.bf16.msra.mxu3 %v1750_v39 }
  0xa8   :  { %v690_v28 = vpop.f32.mrf.mxu2  ;;  %v666_v29 = vpop.f32.mrf.mxu0 }
  0xa9   :  { %v679_v38 = vpop.f32.mrf.mxu1  ;;  %v703_v41 = vpop.f32.mrf.mxu3  ;;  %v691_v46 = vadd.f32 %v690_v28, %v678_v44  ;;  %v1777_v28 = vld [vmem:[%s2926_s6 + $0xa0] sm:$0xf]  ;;  %v1937_v29 = vld [vmem:[%s2926_s6 + $0xa4] sm:$0xf0] }
  0xaa   :  { %v1778_v34 = vor.u32 %v1937_v29, %v1777_v28  ;;  %v1811_v38 = vld [vmem:[%s2926_s6 + $0xe8] sm:$0xf0] }
  0xab   :  { %v704_v54 = vadd.f32 %v703_v41, %v691_v46  ;;  %v1814_v40 = vor.u32 %v1944_v37, %v1811_v38  ;;  %v1769_v41 = vld [vmem:[%s2926_s6 + $0x90] sm:$0xf]  ;;  %v1739_v46 = vld [vmem:[%s2926_s6 + $0x58] sm:$0xf0] }
  0xac   :  { %1162 = vmatpush.bf16.msra.mxu2 %v1778_v34  ;;  %v1770_v44 = vor.u32 %v1935_v42, %v1769_v41 }
  0xad   :  { %1184 = vmatpush.bf16.msrb.mxu0 %v1814_v40 }
  0xb0   :  { %v692_v43 = vpop.f32.mrf.mxu2  ;;  %1163 = vmatpush.bf16.msra.mxu2 %v1770_v44 }
  0xb1   :  { %v705_v47 = vpop.f32.mrf.mxu3  ;;  %v1926_v43 = vld [vmem:[%s2926_s6 + $0x54] sm:$0xf] }
  0xb2   :  { %v1942_v47 = vld [vmem:[%s2926_s6 + $0xd4] sm:$0xf] }
  0xb3   :  { %v1806_v51 = vor.u32 %v1942_v47, %v1803_v49 }
  0xb5   :  { %1185 = vmatpush.bf16.msrb.mxu0 %v1806_v51 }
  0xb8   :  { %v742_v48 = vpop.f32.mrf.mxu2 }
  0xc0   :  { %v716_v59 = vpop.f32.mrf.mxu0  ;;  %v744_v6 = vpop.f32.mrf.mxu2 }
  0xc1   :  { %v717_v0 = vadd.f32 %v716_v59, %v704_v54  ;;  %v729_v1 = vpop.f32.mrf.mxu1  ;;  %v1933_v54 = vld [vmem:[%s2926_s6 + $0x84] sm:$0xf0]  ;;  %v1795_v59 = vld [vmem:[%s2926_s6 + $0xc8] sm:$0xf0]  ;;  %v1920_v6 = vld [vmem:[%s2926_s6 + $0x24] sm:$0xf] }
  0xc2   :  { %v1762_v57 = vor.u32 %v1933_v54, %v1761_v52  ;;  %v1798_v62 = vor.u32 %v1940_v60, %v1795_v59 }
  0xc3   :  { %v730_v19 = vadd.f32 %v729_v1, %v717_v0  ;;  %v1723_v0 = vld [vmem:[%s2926_s6 + $0x38] sm:$0xf0]  ;;  %v1938_v1 = vld [vmem:[%s2926_s6 + $0xb4] sm:$0xf] }
  0xc4   :  { %1164 = vmatpush.bf16.msra.mxu2 %v1762_v57  ;;  %1186 = vmatpush.bf16.msrb.mxu0 %v1798_v62  ;;  %v1726_v3 = vor.u32 %v1922_v63, %v1723_v0  ;;  %v1790_v4 = vor.u32 %v1938_v1, %v1787_v5 }
  0xc5   :  { %v743_v45 = vadd.f32 %v742_v48, %v730_v19  ;;  %v1742_v48 = vor.u32 %v1926_v43, %v1739_v46  ;;  %v1718_v19 = vor.u32 %v1920_v6, %v1715_v7 }
  0xc7   :  { %vm837_vm4 = vcmp.gt.f32.partialorder %v743_v45, 0.0  ;;  %v839_v17 = vmul.f32 0.01, %v743_v45  ;;  %1172 = vmatpush.bf16.msra.mxu3 %v1742_v48 }
  0xc8   :  { %v718_v21 = vpop.f32.mrf.mxu0  ;;  %1187 = vmatpush.bf16.msrb.mxu0 %v1790_v4 }
  0xc9   :  { %v2786_v20 = vpop.f32.mrf.mxu3  ;;  %v841_v24 = vsel %vm837_vm4, %v743_v45, %v839_v17  ;;  %v731_v25 = vpop.f32.mrf.mxu1  ;;  %v1702_v21 = vor.u32 %v1916_v15, %v1699_v16 }
  0xca   :  { %v2803_v32 = vpack.c.bf16 %v841_v24, %v841_v24  ;;  %v756_v45 = vadd.f32 %v2786_v20, %v158_v2  ;;  %v1763_v20 = vld [vmem:[%s2926_s6 + $0x88] sm:$0xf0] }
  0xcb   :  { %1173 = vmatpush.bf16.msra.mxu3 %v1734_v61  ;;  %v1766_v22 = vor.u32 %v1932_v18, %v1763_v20  ;;  %v1196_v61 = vld [vmem:[%s2932_s8] sm:$0x3] }
  0xcc   :  { %v2805_v33 = vpop.f32.mrf.mxu2  ;;  %1152 = vmatmul.bf16.vlgmr.msra.gmra.mxu1 %v2803_v32  ;;  %1188 = vmatpush.bf16.msrb.mxu0 %v1782_v30  ;;  %v1198_v0 = vperm.slane %v1196_v61, 0  ;;  %v1199_v5 = vperm.slane %v1196_v61, 1 }
  0xcd   :  { %v769_v17 = vadd.f32 %v2805_v33, %v756_v45  ;;  %v1953_v33 = vld [vmem:[%s2928_s5] ss:$0 sm:$0xff] }
  0xcf   :  { %1174 = vmatpush.bf16.msra.mxu3 %v1726_v3 }
  0xd0   :  { %1189 = vmatpush.bf16.msrb.mxu0 %v1774_v14  ;;  %v1954_v14 = vld [vmem:[#allocation2] ss:$0 sm:$0xff] }
  0xd1   :  { %v757_v50 = vpop.f32.mrf.mxu3 }
  0xd3   :  { %1175 = vmatpush.bf16.msra.mxu3 %v1718_v19  ;;  %v1213_v19 = vperm.slane %v1210_v53, 1 }
  0xd4   :  { %v770_v56 = vpop.f32.mrf.mxu2  ;;  %1190 = vmatpush.bf16.msrb.mxu0 %v1766_v22 }
  0xd7   :  { %1176 = vmatpush.bf16.msra.mxu3 %v1710_v11 }
  0xdb   :  { %1177 = vmatpush.bf16.msra.mxu3 %v1702_v21 }
  0xe0   :  { %v781_v12 = vpop.f32.mrf.mxu0 }
  0xe1   :  { %v794_v13 = vpop.f32.mrf.mxu1  ;;  %v782_v23 = vadd.f32 %v781_v12, %v769_v17 }
  0xe3   :  { %v795_v28 = vadd.f32 %v794_v13, %v782_v23 }
  0xe8   :  { %v783_v25 = vpop.f32.mrf.mxu0 }
  0xe9   :  { %v807_v24 = vpop.f32.mrf.mxu3  ;;  %v796_v26 = vpop.f32.mrf.mxu1 }
  0xea   :  { %v808_v31 = vadd.f32 %v807_v24, %v795_v28 }
  0xec   :  { %v820_v29 = vpop.f32.mrf.mxu2 }
  0xed   :  { %v821_v34 = vadd.f32 %v820_v29, %v808_v31 }
  0xf0   :  { %v833_v37 = vpop.f32.mrf.mxu0 }
  0xf1   :  { %v809_v36 = vpop.f32.mrf.mxu3  ;;  %v871_v38 = vpop.f32.mrf.mxu1  ;;  %v834_v39 = vadd.f32 %v833_v37, %v821_v34 }
  0xf2   :  { %v872_v40 = vadd.f32 %v1953_v33, %v871_v38 }
  0xf3   :  { %vm838_vm5 = vcmp.gt.f32.partialorder %v834_v39, 0.0  ;;  %v840_v42 = vmul.f32 0.01, %v834_v39 }
  0xf4   :  { %v822_v41 = vpop.f32.mrf.mxu2  ;;  %vm875_vm6 = vcmp.gt.f32.partialorder %v872_v40, 0.0  ;;  %v876_v43 = vmul.f32 0.01, %v872_v40 }
  0xf5   :  { %v842_v44 = vsel %vm838_vm5, %v834_v39, %v840_v42 }
  0xf6   :  { %v877_v46 = vsel %vm875_vm6, %v872_v40, %v876_v43  ;;  %v879_v47 = vpack.c.bf16 %v842_v44, %v842_v44 }
  0xf7   :  { %v910_v48 = vpack.c.bf16 %v877_v46, %v877_v46 }
  0xf8   :  { %v835_v50 = vpop.f32.mrf.mxu0  ;;  %1815 = vmatmul.msk.bf16.vlgmr.msra.gmra.mxu2 %vm1140_vm8, %v879_v47 }
  0xf9   :  { %v873_v49 = vpop.f32.mrf.mxu1  ;;  %1693 = vmatmul.msk.bf16.vlgmr.msrb.gmra.mxu3 %vm953_vm7, %v910_v48  ;;  %1694 = vmatmul.msk.bf16.vlgmr.msra.gmra.mxu0 %vm953_vm7, %v910_v48 }
 0x109   :  { %1178 = vmatmul.bf16.vlgmr.msra.gmra.mxu3 %v2803_v32  ;;  %1816 = vmatmul.msk.bf16.vlgmr.msrb.gmra.mxu0 %vm1140_vm8, %v879_v47 }
 0x149   :  { %v1153_v51 = vpop.f32.mrf.mxu1 }
 0x151   :  { %v1155_v52 = vpop.f32.mrf.mxu1 }
 0x176   :  { %v986_v54 = vpop.f32.mrf.mxu0 }
 0x17b   :  { %v1166_v57 = vpop.f32.mrf.mxu2 }
 0x17c   :  { %v973_v56 = vpop.f32.mrf.mxu3 }
 0x17d   :  { %v1154_v60 = vadd.f32 %v1153_v51, %v973_v56 }
 0x17e   :  { %v988_v58 = vpop.f32.mrf.mxu0 }
 0x17f   :  { %v1167_v63 = vadd.f32 %v1166_v57, %v1154_v60 }
 0x181   :  { %v1202_v1 = vadd.f32 %v1198_v0, %v1167_v63 }
 0x183   :  { %v1168_v32 = vpop.f32.mrf.mxu2  ;;  %v1206_v7 = vmul.f32 0.01, %v1202_v1  ;;  %vm1204_vm9 = vcmp.gt.f32.partialorder %v1202_v1, 0.0 }
 0x184   :  { %v975_v59 = vpop.f32.mrf.mxu3 }
 0x185   :  { %v1208_v45 = vsel %vm1204_vm9, %v1202_v1, %v1206_v7 }
 0x186   :  { %v1192_v62 = vpop.f32.mrf.mxu0  ;;  %v1216_v11 = vmul.f32 %v1212_v35, %v1208_v45 }
 0x18c   :  { %v1179_v2 = vpop.f32.mrf.mxu3 }
 0x18d   :  { %v1180_v3 = vadd.f32 %v1179_v2, %v986_v54 }
 0x18e   :  { %v1194_v4 = vpop.f32.mrf.mxu0 }
 0x18f   :  { %v1193_v6 = vadd.f32 %v1192_v62, %v1180_v3 }
 0x191   :  { %v1203_v27 = vadd.f32 %v1199_v5, %v1193_v6 }
 0x193   :  { %vm1205_vm10 = vcmp.gt.f32.partialorder %v1203_v27, 0.0  ;;  %v1207_v30 = vmul.f32 0.01, %v1203_v27 }
 0x194   :  { %v1181_v8 = vpop.f32.mrf.mxu3 }
 0x195   :  { %v1209_v9 = vsel %vm1205_vm10, %v1203_v27, %v1207_v30 }
 0x196   :  { %v1217_v10 = vmul.f32 %v1213_v19, %v1209_v9 }
 0x198   :  { %v1218_v12 = vsel %vm1140_vm8, %v1217_v10, 0.0 }
 0x199   :  { %v1219_v13 = vadd.f32 %v1218_v12, %v1216_v11 }
 0x19b   :  { %1220 = vadd.xlane.f32.xlu0 %v1219_v13 }
 0x20e   :  { %v1221_v15 = vpop.xlane.xlu0 %1220 }
 0x20f   :  { %v1226_v16 = vadd.f32 %v1954_v14, %v1221_v15 }
 0x211   :  { %1227 = vxpose.xlu0.b32.start.end [1/1] (short) (narrow) %v1226_v16, 8 }
 0x2b5   :  { %v1243_v17 = vpop.trf.xlu0 }
 0x2b6   :  { %v1259_v18 = vsub.f32 0.0, %v1243_v17 }
 0x2b8   :  { %v1260_v20 = vmul.f32 1.442695, %v1259_v18 }
 0x2ba   :  { %1955 = vpow2.f32 %v1260_v20 }
 0x2c0   :  { %v1956_v21 = vpop.eup %1955 }
 0x2c1   :  { %v1262_v22 = vadd.f32 1.0, %v1956_v21 }
 0x2c3   :  { %1957 = vrcp.f32 %v1262_v22 }
 0x2c9   :  { %v1958_v23 = vpop.eup %1957 }
 0x2ca   :  { %1265 = vst.msk [vmem:[%s2934_s11] sm:$0x1] %vm1264_vm11, %v1958_v23 }

</bundles_post_ra>
